<compile_context>
chip_gen: v6e
topology: v6e:2x2x1
jax: 0.10.0
libtpu: 0.0.40
codegen_flags: <defaults>
</compile_context>

<pallas_src>
import functools

import jax
import jax.numpy as jnp
from jax import lax
from jax.experimental import pallas as pl
from jax.experimental.pallas import tpu as pltpu


def _diff_loss_kernel(x1_ref, x2_ref, out_ref, n1_acc, n2_acc, g_acc,
                      *, m, p, tp, needs_mask):
    step = pl.program_id(0)

    @pl.when(step == 0)
    def _init():
        n1_acc[...] = jnp.zeros_like(n1_acc)
        n2_acc[...] = jnp.zeros_like(n2_acc)
        g_acc[...] = jnp.zeros_like(g_acc)

    x1 = x1_ref[...]                      # (TP, M), input dtype
    x2 = x2_ref[...]

    if needs_mask:                        # only traced when P % TP != 0
        row = lax.broadcasted_iota(jnp.int32, (tp, 1), 0) + step * tp
        valid = row < p
        x1 = jnp.where(valid, x1, jnp.zeros_like(x1))
        x2 = jnp.where(valid, x2, jnp.zeros_like(x2))

    # Column sum-of-squares (f32 only for accumulation; tiles stay in input dtype).
    x1f = x1.astype(jnp.float32)
    x2f = x2.astype(jnp.float32)
    n1_acc[...] += jnp.sum(x1f * x1f, axis=0, keepdims=True)
    n2_acc[...] += jnp.sum(x2f * x2f, axis=0, keepdims=True)

    # Raw Gram accumulation: X1_tile^T @ X2_tile (contract the leading P axis).
    g_acc[...] += lax.dot_general(
        x1, x2,
        dimension_numbers=(((0,), (0,)), ((), ())),
        preferred_element_type=jnp.float32,
    )

    @pl.when(step == pl.num_programs(0) - 1)
    def _epilogue():
        eps = jnp.float32(1e-6)
        a = 1.0 / (jnp.sqrt(n1_acc[...]) + eps)           # (1, M) exact recips
        b = 1.0 / (jnp.sqrt(n2_acc[...]) + eps)           # (1, M)
        ag = jnp.dot(a, g_acc[...],
                     preferred_element_type=jnp.float32)  # (1, M) = a^T G
        s = jnp.sum(ag * b, axis=1, keepdims=True)        # (1, 1) = a^T G b
        mean = s / jnp.float32(m * m)
        out_ref[...] = mean * mean


def _choose_row_tile(p, m, itemsize, block_p):
    # Keep the double-buffered input tiles well under the scoped-VMEM default.
    budget = 24 * 1024 * 1024
    cap = max(8, budget // max(1, 4 * m * itemsize))
    tp = min(block_p, cap)
    if tp >= p:
        return p
    return max(8, (tp // 8) * 8)


def channel_wise_diff_loss(input1, input2, *, block_p=512):
    """input1, input2: NCHW arrays (same shape/dtype). Returns scalar f32 loss."""
    assert input1.shape == input2.shape
    n, c, h, w = input1.shape
    p = h * w
    m = n * c

    # torch's .view(P, -1) on a contiguous NCHW buffer is a raw row-major
    # regroup; jnp.reshape on the NCHW array reproduces it exactly.
    x1 = jnp.reshape(input1, (p, m))
    x2 = jnp.reshape(input2, (p, m))

    itemsize = jnp.dtype(x1.dtype).itemsize
    tp = _choose_row_tile(p, m, itemsize, block_p)
    steps = pl.cdiv(p, tp)
    needs_mask = (p % tp) != 0

    kernel = functools.partial(
        _diff_loss_kernel, m=m, p=p, tp=tp, needs_mask=needs_mask)

    vmem_needed = (2 * 2 * tp * m * itemsize          # double-buffered input tiles
                   + (m * m + 2 * m) * 4              # f32 accumulators
                   + (1 << 20))                       # headroom
    vmem_limit = int(min(max(vmem_needed, 16 << 20), 64 << 20))

    out = pl.pallas_call(
        kernel,
        grid=(steps,),
        in_specs=[
            pl.BlockSpec((tp, m), lambda i: (i, 0)),
            pl.BlockSpec((tp, m), lambda i: (i, 0)),
        ],
        out_specs=pl.BlockSpec((1, 1), lambda i: (0, 0)),
        out_shape=jax.ShapeDtypeStruct((1, 1), jnp.float32),
        scratch_shapes=[
            pltpu.VMEM((1, m), jnp.float32),   # sum of squares, input1 columns
            pltpu.VMEM((1, m), jnp.float32),   # sum of squares, input2 columns
            pltpu.VMEM((m, m), jnp.float32),   # raw Gram accumulator
        ],
        compiler_params=pltpu.CompilerParams(
            dimension_semantics=("arbitrary",),
            vmem_limit_bytes=vmem_limit,
        ),
    )(x1, x2)
    return out[0, 0]


def _reference(input1, input2):
    n, c, h, w = input1.shape
    p = h * w
    x1 = jnp.reshape(input1, (p, -1)).astype(jnp.float32)
    x2 = jnp.reshape(input2, (p, -1)).astype(jnp.float32)
    n1 = jnp.linalg.norm(x1, axis=0, keepdims=True)
    n2 = jnp.linalg.norm(x2, axis=0, keepdims=True)
    x1n = x1 / (n1 + 1e-6)
    x2n = x2 / (n2 + 1e-6)
    g = jnp.dot(x1n.T, x2n, precision=lax.Precision.HIGHEST)
    return jnp.mean(g) ** 2


if __name__ == "__main__":
    key = jax.random.PRNGKey(0)
    k1, k2 = jax.random.split(key)
    # small NCHW inputs: batch=2, channels=4, spatial=16x16 -> P=256, M=8
    input1 = jax.random.normal(k1, (2, 4, 16, 16), dtype=jnp.float32)
    input2 = jax.random.normal(k2, (2, 4, 16, 16), dtype=jnp.float32)

    # block_p=128 -> grid of 2 steps over P=256: exercises the streaming
    # accumulate + epilogue path rather than a single monolithic block.
    loss = channel_wise_diff_loss(input1, input2, block_p=128)
    loss = jax.block_until_ready(loss)

    ref = jax.block_until_ready(_reference(input1, input2))
    assert jnp.allclose(loss, ref, rtol=1e-4, atol=2e-6), (loss, ref)

    print("KERNEL_OK")
</pallas_src>

<mosaic_0001>
module attributes {stable_mosaic.version = 11 : i64} {
  func.func @_diff_loss_kernel(%arg0: i32, %arg1: memref<128x8xf32, #tpu.memory_space<vmem>>, %arg2: memref<128x8xf32, #tpu.memory_space<vmem>>, %arg3: memref<1x1xf32, #tpu.memory_space<vmem>>, %arg4: memref<1x8xf32, #tpu.memory_space<vmem>>, %arg5: memref<1x8xf32, #tpu.memory_space<vmem>>, %arg6: memref<8x8xf32, #tpu.memory_space<vmem>>) attributes {dimension_semantics = [#tpu.dimension_semantics<arbitrary>], iteration_bounds = array<i64: 2>, scalar_prefetch = 0 : i64, scratch_operands = 3 : i64, tpu.core_type = #tpu.core_type<tc>, window_params = [{transform_indices = @transform_0, window_bounds = array<i64: 128, 8>}, {transform_indices = @transform_1, window_bounds = array<i64: 128, 8>}, {pipeline_mode = #tpu.pipeline_mode<synchronous>, transform_indices = @transform_2, window_bounds = array<i64: 1, 1>}]} {
    %c0_i32 = arith.constant 0 : i32
    %0 = arith.cmpi eq, %arg0, %c0_i32 : i32
    %1 = arith.extui %0 : i1 to i32
    %c0_i32_0 = arith.constant 0 : i32
    %2 = arith.cmpi ne, %1, %c0_i32_0 : i32
    scf.if %2 {
      %cst_19 = arith.constant 0.000000e+00 : f32
      %24 = vector.broadcast %cst_19 : f32 to vector<1x8xf32>
      %c0_20 = arith.constant 0 : index
      %c0_21 = arith.constant 0 : index
      %25 = vector.load %arg4[%c0_20, %c0_21] : memref<1x8xf32, #tpu.memory_space<vmem>>, vector<1x8xf32>
      tpu.vector_store %arg4[%c0_20, %c0_21], %24 {strides = array<i32>} : memref<1x8xf32, #tpu.memory_space<vmem>>, vector<1x8xf32>,
      %cst_22 = arith.constant 0.000000e+00 : f32
      %26 = vector.broadcast %cst_22 : f32 to vector<1x8xf32>
      %c0_23 = arith.constant 0 : index
      %c0_24 = arith.constant 0 : index
      %27 = vector.load %arg5[%c0_23, %c0_24] : memref<1x8xf32, #tpu.memory_space<vmem>>, vector<1x8xf32>
      tpu.vector_store %arg5[%c0_23, %c0_24], %26 {strides = array<i32>} : memref<1x8xf32, #tpu.memory_space<vmem>>, vector<1x8xf32>,
      %cst_25 = arith.constant 0.000000e+00 : f32
      %28 = vector.broadcast %cst_25 : f32 to vector<8x8xf32>
      %c0_26 = arith.constant 0 : index
      %c0_27 = arith.constant 0 : index
      %29 = vector.load %arg6[%c0_26, %c0_27] : memref<8x8xf32, #tpu.memory_space<vmem>>, vector<8x8xf32>
      tpu.vector_store %arg6[%c0_26, %c0_27], %28 {strides = array<i32>} : memref<8x8xf32, #tpu.memory_space<vmem>>, vector<8x8xf32>,
    } else {
    }
    %c0 = arith.constant 0 : index
    %c0_1 = arith.constant 0 : index
    %3 = vector.load %arg1[%c0, %c0_1] : memref<128x8xf32, #tpu.memory_space<vmem>>, vector<128x8xf32>
    %c0_2 = arith.constant 0 : index
    %c0_3 = arith.constant 0 : index
    %4 = vector.load %arg2[%c0_2, %c0_3] : memref<128x8xf32, #tpu.memory_space<vmem>>, vector<128x8xf32>
    %c0_4 = arith.constant 0 : index
    %c0_5 = arith.constant 0 : index
    %5 = vector.load %arg4[%c0_4, %c0_5] : memref<1x8xf32, #tpu.memory_space<vmem>>, vector<1x8xf32>
    %6 = arith.mulf %3, %3 : vector<128x8xf32>
    %cst = arith.constant dense<0.000000e+00> : vector<8xf32>
    %7 = vector.multi_reduction <add>, %6, %cst [0] : vector<128x8xf32> to vector<8xf32>
    %8 = vector.shape_cast %7 : vector<8xf32> to vector<1x8xf32>
    %9 = arith.addf %5, %8 : vector<1x8xf32>
    %c0_6 = arith.constant 0 : index
    %c0_7 = arith.constant 0 : index
    %10 = vector.load %arg4[%c0_6, %c0_7] : memref<1x8xf32, #tpu.memory_space<vmem>>, vector<1x8xf32>
    tpu.vector_store %arg4[%c0_6, %c0_7], %9 {strides = array<i32>} : memref<1x8xf32, #tpu.memory_space<vmem>>, vector<1x8xf32>,
    %c0_8 = arith.constant 0 : index
    %c0_9 = arith.constant 0 : index
    %11 = vector.load %arg5[%c0_8, %c0_9] : memref<1x8xf32, #tpu.memory_space<vmem>>, vector<1x8xf32>
    %12 = arith.mulf %4, %4 : vector<128x8xf32>
    %cst_10 = arith.constant dense<0.000000e+00> : vector<8xf32>
    %13 = vector.multi_reduction <add>, %12, %cst_10 [0] : vector<128x8xf32> to vector<8xf32>
    %14 = vector.shape_cast %13 : vector<8xf32> to vector<1x8xf32>
    %15 = arith.addf %11, %14 : vector<1x8xf32>
    %c0_11 = arith.constant 0 : index
    %c0_12 = arith.constant 0 : index
    %16 = vector.load %arg5[%c0_11, %c0_12] : memref<1x8xf32, #tpu.memory_space<vmem>>, vector<1x8xf32>
    tpu.vector_store %arg5[%c0_11, %c0_12], %15 {strides = array<i32>} : memref<1x8xf32, #tpu.memory_space<vmem>>, vector<1x8xf32>,
    %c0_13 = arith.constant 0 : index
    %c0_14 = arith.constant 0 : index
    %17 = vector.load %arg6[%c0_13, %c0_14] : memref<8x8xf32, #tpu.memory_space<vmem>>, vector<8x8xf32>
    %cst_15 = arith.constant dense<0.000000e+00> : vector<8x8xf32>
    %18 = tpu.matmul %3, %4, %cst_15 {dimension_numbers = #tpu.dot_dimension_numbers<[0], [0], [1], [1], [0, 1, 1, 1], [], []>} : vector<128x8xf32>, vector<128x8xf32>, vector<8x8xf32> -> vector<8x8xf32>
    %19 = arith.addf %17, %18 : vector<8x8xf32>
    %c0_16 = arith.constant 0 : index
    %c0_17 = arith.constant 0 : index
    %20 = vector.load %arg6[%c0_16, %c0_17] : memref<8x8xf32, #tpu.memory_space<vmem>>, vector<8x8xf32>
    tpu.vector_store %arg6[%c0_16, %c0_17], %19 {strides = array<i32>} : memref<8x8xf32, #tpu.memory_space<vmem>>, vector<8x8xf32>,
    %c1_i32 = arith.constant 1 : i32
    %21 = arith.cmpi eq, %arg0, %c1_i32 : i32
    %22 = arith.extui %21 : i1 to i32
    %c0_i32_18 = arith.constant 0 : i32
    %23 = arith.cmpi ne, %22, %c0_i32_18 : i32
    scf.if %23 {
      %c0_19 = arith.constant 0 : index
      %c0_20 = arith.constant 0 : index
      %24 = vector.load %arg4[%c0_19, %c0_20] : memref<1x8xf32, #tpu.memory_space<vmem>>, vector<1x8xf32>
      %25 = math.sqrt %24 : vector<1x8xf32>
      %cst_21 = arith.constant 9.99999997E-7 : f32
      %26 = vector.broadcast %cst_21 : f32 to vector<1x8xf32>
      %27 = arith.addf %25, %26 : vector<1x8xf32>
      %cst_22 = arith.constant 1.000000e+00 : f32
      %28 = vector.broadcast %cst_22 : f32 to vector<1x8xf32>
      %29 = arith.divf %28, %27 : vector<1x8xf32>
      %c0_23 = arith.constant 0 : index
      %c0_24 = arith.constant 0 : index
      %30 = vector.load %arg5[%c0_23, %c0_24] : memref<1x8xf32, #tpu.memory_space<vmem>>, vector<1x8xf32>
      %31 = math.sqrt %30 : vector<1x8xf32>
      %cst_25 = arith.constant 9.99999997E-7 : f32
      %32 = vector.broadcast %cst_25 : f32 to vector<1x8xf32>
      %33 = arith.addf %31, %32 : vector<1x8xf32>
      %cst_26 = arith.constant 1.000000e+00 : f32
      %34 = vector.broadcast %cst_26 : f32 to vector<1x8xf32>
      %35 = arith.divf %34, %33 : vector<1x8xf32>
      %c0_27 = arith.constant 0 : index
      %c0_28 = arith.constant 0 : index
      %36 = vector.load %arg6[%c0_27, %c0_28] : memref<8x8xf32, #tpu.memory_space<vmem>>, vector<8x8xf32>
      %cst_29 = arith.constant dense<0.000000e+00> : vector<1x8xf32>
      %37 = tpu.matmul %29, %36, %cst_29 {dimension_numbers = #tpu.dot_dimension_numbers<[1], [0], [0], [1], [0, 0, 1, 1], [], []>} : vector<1x8xf32>, vector<8x8xf32>, vector<1x8xf32> -> vector<1x8xf32>
      %38 = arith.mulf %37, %35 : vector<1x8xf32>
      %cst_30 = arith.constant dense<0.000000e+00> : vector<1xf32>
      %39 = vector.multi_reduction <add>, %38, %cst_30 [1] : vector<1x8xf32> to vector<1xf32>
      %40 = vector.shape_cast %39 : vector<1xf32> to vector<1x1xf32>
      %cst_31 = arith.constant 6.400000e+01 : f32
      %41 = vector.broadcast %cst_31 : f32 to vector<1x1xf32>
      %42 = arith.divf %40, %41 : vector<1x1xf32>
      %43 = arith.mulf %42, %42 : vector<1x1xf32>
      %c0_32 = arith.constant 0 : index
      %c0_33 = arith.constant 0 : index
      %44 = vector.load %arg3[%c0_32, %c0_33] : memref<1x1xf32, #tpu.memory_space<vmem>>, vector<1x1xf32>
      tpu.vector_store %arg3[%c0_32, %c0_33], %43 {strides = array<i32>} : memref<1x1xf32, #tpu.memory_space<vmem>>, vector<1x1xf32>,
    } else {
    }
    return
  }
  func.func @transform_0(%arg0: i32) -> (i32, i32) {
    %c0_i32 = arith.constant 0 : i32
    %c0_i32_0 = arith.constant 0 : i32
    return %arg0, %c0_i32 : i32, i32
  }
  func.func @transform_1(%arg0: i32) -> (i32, i32) {
    %c0_i32 = arith.constant 0 : i32
    %c0_i32_0 = arith.constant 0 : i32
    return %arg0, %c0_i32 : i32, i32
  }
  func.func @transform_2(%arg0: i32) -> (i32, i32) {
    %c0_i32 = arith.constant 0 : i32
    %c0_i32_0 = arith.constant 0 : i32
    %c0_i32_1 = arith.constant 0 : i32
    return %c0_i32, %c0_i32_0 : i32, i32
  }
}

</mosaic_0001>

<bundles_post_ra>
// kernel: tpu_custom_call.1
= control target key start
LH: loop header
LB: loop body
LE: loop exit
PB: predicated region body
PF: predicated region fallthrough
CT: control target
= control target key end

     0   :  { %7 = vsyncpa [#allocation6], 0  ;;  %s740_s9 = smov 0   ;;  %s974_s0 = inlined_call_operand.vmem [shape: f32[256,8], index: 0, kind: input, shape index: {}]   ;;  %s975_s1 = inlined_call_operand.vmem [shape: f32[256,8], index: 1, kind: input, shape index: {}]   ;;  %s976_s2 = inlined_call_operand.hbm [shape: f32[1,1], index: 2, kind: output, shape index: {}]  }
   0x1 LB: > { %s746_s10 = sadd.s32 4294967295, %s717_s9   ;;  %p584_p0 = scmp.ge.s32.totalorder %s717_s9, 1  ;;  %s717_s9 = sphi %s740_s9, %s13_s9  }
   0x2   : > { %p120_p1 = scmp.lt.s32.totalorder %s717_s9, 3 }
   0x4   : > { %p121_p2 = pnand %p584_p0, %p120_p1 }
   0x5   : > { %s585_s11 = sshll.u32 (!%p121_p2), %s746_s10, 4  ;;  %p589_p4 = scmp.ne.s32.totalorder (!%p121_p2), %s746_s10, 0 }
   0x6   : > { %124 = sbr.rel (%p121_p2) target bundleno = 730 (0x2da), region = 28  ;;  %p143_p3 = scmp.lt.s32.totalorder (!%p121_p2), %s585_s11, 31 }
   0xb   : > { %s978_s11 = smov (!%p143_p3, %s585_s11), 31  ;;  %157 = sbr.rel (%p589_p4) target bundleno = 19 (0x13), region = 32 }
   0xc   : > { %s586_s12 = sshll.u32 %s978_s11, 3 }
   0xd   : > { %s754_s15 = scalar_lea.vmem %s974_s0, %s586_s12  ;;  %s759_s18 = scalar_lea.vmem %s975_s1, %s586_s12 }
  0x10   : > { %vm158_vm0 = vcmask 57344   ;;  %vm161_vm1 = vcmask 64512   ;;  %v719_v0 = vmov 0.0  }
  0x11   : > { %159 = vst.msk [vmem:[#allocation2] sm:$0x1] %vm158_vm0, %v719_v0  ;;  %160 = vst.msk [vmem:[#allocation3] sm:$0x1] %vm158_vm0, %v719_v0 }
  0x12   : > { %162 = vst.msk [vmem:[#allocation4] sm:$0xff] %vm161_vm1, %v719_v0 }
  0x13 PF: > { %v163_v1 = vld [vmem:[%s754_s15] sm:$0xff]  ;;  %vm212_vm2 = vcmask 64512   ;;  %v164_v2 = vld [vmem:[%s754_s15 + $0x8] sm:$0xff]  ;;  %v165_v3 = vld [vmem:[%s754_s15 + $0x10] sm:$0xff]  ;;  %v720_v8 = vmov 0.0   ;;  %vm721_vm3 = vmmov 0  }
  0x14   : > { %v196_v4 = vmul.f32 %v163_v1, %v163_v1  ;;  %310 = vxpose.xlu0.b32.start [1/16] (narrow) %v163_v1, 8  ;;  %v197_v5 = vmul.f32 %v164_v2, %v164_v2  ;;  %v198_v6 = vmul.f32 %v165_v3, %v165_v3  ;;  %v166_v7 = vld [vmem:[%s754_s15 + $0x18] sm:$0xff]  ;;  %615 = vmatprep.subr.mxu0 %v720_v8  ;;  %v167_v10 = vld [vmem:[%s754_s15 + $0x20] sm:$0xff]  ;;  %v773_v16 = vld [vmem:[%s754_s15 + $0x28] sm:$0xff]  ;;  %vm251_vm4 = vcmask 57344   ;;  %p590_p5 = scmp.ne.s32.totalorder %s746_s10, 1 }
  0x15   : > { %v199_v9 = vmul.f32 %v166_v7, %v166_v7  ;;  %647 = vmatprep.mubr.msk.f32.mxu0 %vm721_vm3, %v720_v8  ;;  %v200_v14 = vmul.f32 %v167_v10, %v167_v10  ;;  %v201_v18 = vmul.f32 %v773_v16, %v773_v16  ;;  %v779_v19 = vld [vmem:[%s759_s18 + $0x78] sm:$0xff]  ;;  %v782_v21 = vld [vmem:[%s754_s15 + $0x30] sm:$0xff]  ;;  %v793_v25 = vld [vmem:[%s759_s18 + $0x68] sm:$0xff] }
  0x16   : > { %v213_v11 = vsel %vm212_vm2, %v196_v4, 0.0  ;;  %v214_v12 = vsel %vm212_vm2, %v197_v5, 0.0  ;;  %v216_v13 = vsel %vm212_vm2, %v198_v6, 0.0  ;;  %616 = vmatpush3.msra.mxu0 %v779_v19  ;;  %v786_v22 = vld [vmem:[%s759_s18 + $0x70] sm:$0xff]  ;;  %v202_v24 = vmul.f32 %v782_v21, %v782_v21  ;;  %v796_v27 = vld [vmem:[%s754_s15 + $0x38] sm:$0xff]  ;;  %v804_v30 = vld [vmem:[%s759_s18 + $0x60] sm:$0xff] }
  0x17   : > { %v215_v15 = vadd.f32 %v214_v12, %v213_v11  ;;  %v218_v17 = vsel %vm212_vm2, %v199_v9, 0.0  ;;  %v220_v23 = vsel %vm212_vm2, %v200_v14, 0.0  ;;  %617 = vmatprep.subr.mxu0 %v720_v8  ;;  %v222_v28 = vsel %vm212_vm2, %v201_v18, 0.0  ;;  %v807_v32 = vld [vmem:[%s754_s15 + $0x40] sm:$0xff]  ;;  %v815_v35 = vld [vmem:[%s759_s18 + $0x58] sm:$0xff]  ;;  %v818_v37 = vld [vmem:[%s754_s15 + $0x48] sm:$0xff] }
  0x18   : > { %311 = vxpose.xlu0.b32.cont [2/16] (narrow) %v164_v2, 8  ;;  %618 = vmatpush3.msra.mxu0 %v786_v22  ;;  %v203_v29 = vmul.f32 %v796_v27, %v796_v27  ;;  %v224_v33 = vsel %vm212_vm2, %v202_v24, 0.0  ;;  %v204_v34 = vmul.f32 %v807_v32, %v807_v32  ;;  %v205_v39 = vmul.f32 %v818_v37, %v818_v37  ;;  %v826_v40 = vld [vmem:[%s759_s18 + $0x50] sm:$0xff]  ;;  %v837_v45 = vld [vmem:[%s759_s18 + $0x48] sm:$0xff]  ;;  %v840_v47 = vld [vmem:[%s754_s15 + $0x58] sm:$0xff] }
  0x19   : > { %v217_v20 = vadd.f32 %v216_v13, %v215_v15  ;;  %619 = vmatprep.subr.mxu0 %v720_v8  ;;  %v829_v42 = vld [vmem:[%s754_s15 + $0x50] sm:$0xff]  ;;  %v847_v49 = vld [vmem:[%s759_s18 + $0x8] sm:$0xff]  ;;  %v207_v51 = vmul.f32 %v840_v47, %v840_v47  ;;  %v187_v52 = vld [vmem:[%s759_s18 + $0x40] sm:$0xff] }
  0x1a   : > { %620 = vmatpush3.msra.mxu0 %v793_v25  ;;  %v226_v38 = vsel %vm212_vm2, %v203_v29, 0.0  ;;  %v228_v43 = vsel %vm212_vm2, %v204_v34, 0.0  ;;  %v206_v44 = vmul.f32 %v829_v42, %v829_v42  ;;  %v844_v48 = vld [vmem:[%s759_s18 + $0x10] sm:$0xff]  ;;  %v230_v50 = vsel %vm212_vm2, %v205_v39, 0.0  ;;  %v855_v53 = vld [vmem:[%s759_s18 + $0x18] sm:$0xff]  ;;  %v862_v56 = vld [vmem:[%s759_s18] sm:$0xff] }
  0x1b   : > { %v219_v26 = vadd.f32 %v218_v17, %v217_v20  ;;  %621 = vmatprep.subr.mxu0 %v720_v8  ;;  %v256_v54 = vmul.f32 %v844_v48, %v844_v48  ;;  %v255_v55 = vmul.f32 %v847_v49, %v847_v49  ;;  %v865_v58 = vld [vmem:[%s754_s15 + $0x60] sm:$0xff]  ;;  %v257_v59 = vmul.f32 %v855_v53, %v855_v53  ;;  %v186_v63 = vld [vmem:[%s759_s18 + $0x38] sm:$0xff]  ;;  %v184_v11 = vld [vmem:[%s759_s18 + $0x28] sm:$0xff] }
  0x1c   : > { %312 = vxpose.xlu0.b32.cont [3/16] (narrow) %v165_v3, 8  ;;  %622 = vmatpush3.msra.mxu0 %v804_v30  ;;  %v254_v60 = vmul.f32 %v862_v56, %v862_v56  ;;  %v232_v61 = vsel %vm212_vm2, %v206_v44, 0.0  ;;  %v208_v62 = vmul.f32 %v865_v58, %v865_v58  ;;  %v183_v0 = vld [vmem:[%s759_s18 + $0x20] sm:$0xff]  ;;  %v880_v3 = vld [vmem:[%s754_s15 + $0x68] sm:$0xff]  ;;  %v892_v14 = vld [vmem:[%s754_s15 + $0x70] sm:$0xff]  ;;  %v259_v15 = vmul.f32 %v184_v11, %v184_v11 }
  0x1d   : > { %v221_v31 = vadd.f32 %v220_v23, %v219_v26  ;;  %623 = vmatprep.subr.mxu0 %v720_v8  ;;  %v271_v1 = vsel %vm212_vm2, %v255_v55, 0.0  ;;  %v258_v4 = vmul.f32 %v183_v0, %v183_v0  ;;  %v273_v5 = vsel %vm212_vm2, %v256_v54, 0.0  ;;  %v900_v24 = vld [vmem:[%s754_s15 + $0x78] sm:$0xff] }
  0x1e   : > { %624 = vmatpush3.msra.mxu0 %v815_v35  ;;  %v270_v6 = vsel %vm212_vm2, %v254_v60, 0.0  ;;  %v209_v9 = vmul.f32 %v880_v3, %v880_v3  ;;  %v275_v17 = vsel %vm212_vm2, %v257_v59, 0.0  ;;  %v210_v18 = vmul.f32 %v892_v14, %v892_v14 }
  0x1f   : > { %v223_v36 = vadd.f32 %v222_v28, %v221_v31  ;;  %625 = vmatprep.subr.mxu0 %v720_v8  ;;  %v272_v12 = vadd.f32 %v271_v1, %v270_v6  ;;  %v277_v28 = vsel %vm212_vm2, %v258_v4, 0.0  ;;  %v211_v31 = vmul.f32 %v900_v24, %v900_v24  ;;  %v195_v6 = vld [vmem:[#allocation2] sm:$0x1] }
  0x20   : > { %313 = vxpose.xlu0.b32.cont [4/16] (narrow) %v166_v7, 8  ;;  %626 = vmatpush3.msra.mxu0 %v826_v40  ;;  %v234_v7 = vsel %vm212_vm2, %v207_v51, 0.0  ;;  %v238_v29 = vsel %vm212_vm2, %v209_v9, 0.0  ;;  %v240_v39 = vsel %vm212_vm2, %v210_v18, 0.0  ;;  %v263_v54 = vmul.f32 %v837_v45, %v837_v45 }
  0x21   : > { %v225_v41 = vadd.f32 %v224_v33, %v223_v36  ;;  %627 = vmatprep.subr.mxu0 %v720_v8  ;;  %v274_v20 = vadd.f32 %v273_v5, %v272_v12  ;;  %v261_v36 = vmul.f32 %v186_v63, %v186_v63 }
  0x22   : > { %628 = vmatpush3.msra.mxu0 %v837_v45 }
  0x23   : > { %v227_v46 = vadd.f32 %v226_v38, %v225_v41  ;;  %629 = vmatprep.subr.mxu0 %v720_v8  ;;  %v276_v33 = vadd.f32 %v275_v17, %v274_v20  ;;  %v279_v38 = vsel %vm212_vm2, %v259_v15, 0.0  ;;  %v283_v55 = vsel %vm212_vm2, %v261_v36, 0.0 }
  0x24   : > { %314 = vxpose.xlu0.b32.cont [5/16] (narrow) %v167_v10, 8  ;;  %630 = vmatpush3.msra.mxu0 %v187_v52  ;;  %v185_v10 = vld [vmem:[%s759_s18 + $0x30] sm:$0xff] }
  0x25   : > { %v229_v57 = vadd.f32 %v228_v43, %v227_v46  ;;  %631 = vmatprep.subr.mxu0 %v720_v8  ;;  %v260_v26 = vmul.f32 %v185_v10, %v185_v10  ;;  %v278_v41 = vadd.f32 %v277_v28, %v276_v33  ;;  %v242_v46 = vsel %vm212_vm2, %v211_v31, 0.0 }
  0x26   : > { %632 = vmatpush3.msra.mxu0 %v186_v63 }
  0x27   : > { %v231_v2 = vadd.f32 %v230_v50, %v229_v57  ;;  %633 = vmatprep.subr.mxu0 %v720_v8  ;;  %v281_v44 = vsel %vm212_vm2, %v260_v26, 0.0  ;;  %v280_v50 = vadd.f32 %v279_v38, %v278_v41 }
  0x28   : > { %315 = vxpose.xlu0.b32.cont [6/16] (narrow) %v773_v16, 8  ;;  %v236_v16 = vsel %vm212_vm2, %v208_v62, 0.0  ;;  %634 = vmatpush3.msra.mxu0 %v185_v10 }
  0x29   : > { %v233_v13 = vadd.f32 %v232_v61, %v231_v2  ;;  %635 = vmatprep.subr.mxu0 %v720_v8  ;;  %v287_v61 = vsel %vm212_vm2, %v263_v54, 0.0  ;;  %v268_v2 = vmul.f32 %v786_v22, %v786_v22 }
  0x2a   : > { %636 = vmatpush3.msra.mxu0 %v184_v11 }
  0x2b   : > { %v235_v23 = vadd.f32 %v234_v7, %v233_v13  ;;  %637 = vmatprep.subr.mxu0 %v720_v8  ;;  %v297_v9 = vsel %vm212_vm2, %v268_v2, 0.0 }
  0x2c   : > { %316 = vxpose.xlu0.b32.cont [7/16] (narrow) %v782_v21, 8  ;;  %v262_v21 = vmul.f32 %v187_v52, %v187_v52  ;;  %638 = vmatpush3.msra.mxu0 %v183_v0  ;;  %v282_v52 = vadd.f32 %v281_v44, %v280_v50 }
  0x2d   : > { %v237_v34 = vadd.f32 %v236_v16, %v235_v23  ;;  %639 = vmatprep.subr.mxu0 %v720_v8  ;;  %v253_v16 = vld [vmem:[#allocation3] sm:$0x1] }
  0x2e   : > { %640 = vmatpush3.msra.mxu0 %v855_v53  ;;  %v285_v59 = vsel %vm212_vm2, %v262_v21, 0.0  ;;  %v284_v45 = vadd.f32 %v283_v55, %v282_v52  ;;  %v265_v53 = vmul.f32 %v815_v35, %v815_v35  ;;  %v267_v35 = vmul.f32 %v793_v25, %v793_v25 }
  0x2f   : > { %v239_v43 = vadd.f32 %v238_v29, %v237_v34  ;;  %641 = vmatprep.subr.mxu0 %v720_v8 }
  0x30   : > { %317 = vxpose.xlu0.b32.cont [8/16] (narrow) %v796_v27, 8  ;;  %v264_v27 = vmul.f32 %v826_v40, %v826_v40  ;;  %642 = vmatpush3.msra.mxu0 %v844_v48  ;;  %v286_v40 = vadd.f32 %v285_v59, %v284_v45  ;;  %v266_v48 = vmul.f32 %v804_v30, %v804_v30  ;;  %v295_v5 = vsel %vm212_vm2, %v267_v35, 0.0 }
  0x31   : > { %v241_v51 = vadd.f32 %v240_v39, %v239_v43  ;;  %643 = vmatprep.subr.mxu0 %v720_v8 }
  0x32   : > { %644 = vmatpush3.msra.mxu0 %v847_v49  ;;  %v288_v63 = vadd.f32 %v287_v61, %v286_v40  ;;  %v291_v49 = vsel %vm212_vm2, %v265_v53, 0.0  ;;  %v293_v30 = vsel %vm212_vm2, %v266_v48, 0.0 }
  0x33   : > { %v243_v57 = vadd.f32 %v242_v46, %v241_v51  ;;  %645 = vmatprep.subr.mxu0 %v720_v8 }
  0x34   : > { %318 = vxpose.xlu0.b32.cont [9/16] (narrow) %v807_v32, 8  ;;  %v289_v32 = vsel %vm212_vm2, %v264_v27, 0.0  ;;  %646 = vmatpush3.msra.mxu0 %v862_v56 }
  0x35   : > { %v244_v60 = vrot.slane %v243_v57, 4  ;;  %v290_v1 = vadd.f32 %v289_v32, %v288_v63 }
  0x37   : > { %v245_v62 = vadd.f32 %v244_v60, %v243_v57  ;;  %v292_v4 = vadd.f32 %v291_v49, %v290_v1 }
  0x38   : > { %319 = vxpose.xlu0.b32.cont [10/16] (narrow) %v818_v37, 8  ;;  %v269_v37 = vmul.f32 %v779_v19, %v779_v19 }
  0x39   : > { %v246_v0 = vrot.slane %v245_v62, 2  ;;  %v294_v25 = vadd.f32 %v293_v30, %v292_v4 }
  0x3a   : > { %v299_v11 = vsel %vm212_vm2, %v269_v37, 0.0 }
  0x3b   : > { %v247_v8 = vadd.f32 %v246_v0, %v245_v62  ;;  %v296_v22 = vadd.f32 %v295_v5, %v294_v25 }
  0x3c   : > { %320 = vxpose.xlu0.b32.cont [11/16] (narrow) %v829_v42, 8 }
  0x3d   : > { %v248_v56 = vrot.slane %v247_v8, 1  ;;  %v298_v42 = vadd.f32 %v297_v9, %v296_v22 }
  0x3f   : > { %v249_v7 = vadd.f32 %v248_v56, %v247_v8  ;;  %v300_v19 = vadd.f32 %v299_v11, %v298_v42 }
  0x40   : > { %321 = vxpose.xlu0.b32.cont [12/16] (narrow) %v840_v47, 8 }
  0x41   : > { %v250_v10 = vadd.f32 %v249_v7, %v195_v6  ;;  %v301_v12 = vrot.slane %v300_v19, 4 }
  0x43   : > { %252 = vst.msk [vmem:[#allocation2] sm:$0x1] %vm251_vm4, %v250_v10  ;;  %v302_v13 = vadd.f32 %v301_v12, %v300_v19 }
  0x44   : > { %322 = vxpose.xlu0.b32.cont [13/16] (narrow) %v865_v58, 8  ;;  %v309_v58 = vld [vmem:[#allocation4] sm:$0xff] }
  0x45   : > { %v303_v15 = vrot.slane %v302_v13, 2 }
  0x47   : > { %v304_v17 = vadd.f32 %v303_v15, %v302_v13 }
  0x48   : > { %323 = vxpose.xlu0.b32.cont [14/16] (narrow) %v880_v3, 8 }
  0x49   : > { %v305_v47 = vrot.slane %v304_v17, 1 }
  0x4b   : > { %v306_v18 = vadd.f32 %v305_v47, %v304_v17 }
  0x4c   : > { %324 = vxpose.xlu0.b32.cont [15/16] (narrow) %v892_v14, 8 }
  0x4d   : > { %v307_v20 = vadd.f32 %v306_v18, %v253_v16 }
  0x4f   : > { %308 = vst.msk [vmem:[#allocation3] sm:$0x1] %vm251_vm4, %v307_v20 }
  0x50   : > { %325 = vxpose.xlu0.b32.end [16/16] (narrow) %v900_v24, 8 }
  0x90   : > { %v326_v23 = vpop.trf.xlu0 }
  0x91   : > { %648 = vmatmul.mubr.f32.vlgmr.msra.gmra.mxu0 %v326_v23 }
 0x150   : > { %417 = sbr.rel (%p590_p5) target bundleno = 715 (0x2cb), region = 36 }
 0x151   : > { %v408_v26 = vpop.f32.mrf.mxu0 }
 0x152   : > { %v412_v28 = vadd.f32 %v408_v26, %v309_v58 }
 0x153   : > { %v649_v29 = vpop.f32.mrf.mxu0 }
 0x154   : > { %413 = vst.msk [vmem:[#allocation4] sm:$0xff] %vm212_vm2, %v412_v28 }
 0x155   : > { %v418_v14 = vld [vmem:[#allocation2] sm:$0x1]  ;;  %v722_v31 = vmov 0.0   ;;  %vm723_vm5 = vmmov 0   ;;  %v429_v43 = vld [vmem:[#allocation3] sm:$0x1] }
 0x156   : > { %650 = vmatprep.subr.mxu0 %v722_v31  ;;  %652 = vmatprep.mubr.msk.f32.mxu0 %vm723_vm5, %v722_v31  ;;  %675 = vrsqrt.f32 %v418_v14  ;;  %vm421_vm6 = vcmp.eq.f32.partialorder %v418_v14, inf  ;;  %v424_v33 = vand.u32 2147483648, %v418_v14  ;;  %vm423_vm7 = vcmp.eq.f32.partialorder %v418_v14, 0.0 }
 0x157   : > { %vm432_vm8 = vcmp.eq.f32.partialorder %v429_v43, inf  ;;  %v435_v46 = vand.u32 2147483648, %v429_v43  ;;  %vm434_vm9 = vcmp.eq.f32.partialorder %v429_v43, 0.0  ;;  %vm521_vm10 = vcmask 0  }
 0x15b   : > { %v440_v3 = vld [vmem:[#allocation4] sm:$0xff] }
 0x15c   : > { %651 = vmatpush3.msra.mxu0 %v440_v3 }
 0x163   : > { %v676_v24 = vpop.eup %675 }
 0x164   : > { %v420_v34 = vmul.f32 %v676_v24, %v418_v14 }
 0x166   : > { %v422_v36 = vsel %vm421_vm6, %v418_v14, %v420_v34 }
 0x167   : > { %v425_v38 = vsel %vm423_vm7, %v424_v33, %v422_v36 }
 0x168   : > { %v426_v39 = vadd.f32 1e-06, %v425_v38 }
 0x16a   : > { %677 = vrcp.f32 %v426_v39 }
 0x16b   : > { %679 = vrsqrt.f32 %v429_v43 }
 0x177   : > { %v678_v41 = vpop.eup %677 }
 0x178   : > { %653 = vmatmul.mubr.msk.f32.vlgmr.msra.gmra.mxu0 %vm212_vm2, %v678_v41  ;;  %v680_v21 = vpop.eup %679 }
 0x179   : > { %v431_v44 = vmul.f32 %v680_v21, %v429_v43 }
 0x17b   : > { %v433_v50 = vsel %vm432_vm8, %v429_v43, %v431_v44 }
 0x17c   : > { %v436_v51 = vsel %vm434_vm9, %v435_v46, %v433_v50 }
 0x17d   : > { %v437_v54 = vadd.f32 1e-06, %v436_v51 }
 0x17f   : > { %681 = vrcp.f32 %v437_v54 }
 0x18c   : > { %v682_v55 = vpop.eup %681 }
 0x238   : > { %v510_v52 = vpop.f32.mrf.mxu0 }
 0x239   : > { %v514_v57 = vmul.f32 %v682_v55, %v510_v52 }
 0x23a   : > { %v654_v27 = vpop.f32.mrf.mxu0 }
 0x23b   : > { %v515_v59 = vsel %vm251_vm4, %v514_v57, 0.0 }
 0x23c   : > { %516 = vadd.xlane.f32.xlu0 %v515_v59 }
 0x2c5   : > { %v517_v45 = vpop.xlane.xlu0 %516 }
 0x2c6   : > { %v519_v60 = vmul.f32 0.015625, %v517_v45 }
 0x2c8   : > { %v520_v53 = vmul.f32 %v519_v60, %v519_v60 }
 0x2ca   : > { %522 = vst.msk [vmem:[#allocation5] sm:$0x1] %vm521_vm10, %v520_v53 }
 0x2cb PF: > { %p659_p6 = scmp.eq.s32.totalorder %s746_s10, 1  ;;  %s724_s19 = smov [#allocation5]  }
 0x2cc   : > { %s530_s20 = sshll.u32 %s724_s19, 4  ;;  %s531_s20 = int_to_ptr.vmem [resolvable:$true] %s530_s20 }
 0x2cd   : > { %s683_s21 = scalar_lea.vmem %s531_s20, 16  ;;  %s689_s22 = scalar_lea.vmem %s531_s20, 32 }
 0x2ce   : > { %p684_p7 = scmp.ne.s32.totalorder %s531_s20, %s683_s21  ;;  %p690_p10 = scmp.lt.s32.totalorder %s531_s20, %s531_s20 }
 0x2cf   : > { %p691_p11 = scmp.lt.s32.totalorder %s689_s22, %s683_s21 }
 0x2d0   : > { %p685_p8 = pnand %p684_p7, %p659_p6 }
 0x2d1   : > { %p692_p12 = por %p691_p11, %p690_p10 }
 0x2d2   : > { %p686_p9 = pneg %p685_p8 }
 0x2d4   : > { %p693_p13 = pnand %p692_p12, %p686_p9 }
 0x2d6   : > { %696 = shalt.err (!%p693_p13)
}
 0x2d7   : > { %656 = dma.vmem_to_hbm [thread:$0]  (%p659_p6), %s531_s20, 16, %s976_s2, [#allocation6]  }
 0x2d8   : > { %712 = dma.done.wait (%p659_p6), [#allocation6], 16  }
 0x2d9   : > { %714 = vsyncadd (%p659_p6), [#allocation6], 4294967280 }
 0x2da PF: > { %s13_s9 = sadd.s32 1, %s717_s9  }
 0x2db   : > { %p10_p0 = scmp.ge.s32.totalorder %s13_s9, 4  }
 0x2dd   :  { %12 = sbr.rel (!%p10_p0) target bundleno = 1 (0x1), region = 66 }
 0x2e2   :  { %543 = vsyncpa [#allocation6], 1 }
 0x2e3   :  { %545 = vsyncpa [#allocation6 + $0x1], 1 }

</bundles_post_ra>
